<compile_context>
chip_gen: v6e
topology: v6e:2x2x1
jax: 0.10.0
libtpu: 0.0.40
codegen_flags: <defaults>
</compile_context>

<pallas_src>
import functools

import jax
import jax.numpy as jnp
from jax.experimental import pallas as pl
from jax.experimental.pallas import tpu as pltpu

DROPOUT_P = 0.2


def _feature_transform_kernel(x_ref, w_ref, o_ref):
    # XW = X @ [W1 | W2]  (f32 accumulate, stored as bf16 for the A @ XW matmul)
    o_ref[...] = jnp.dot(
        x_ref[...], w_ref[...], preferred_element_type=jnp.float32
    ).astype(o_ref.dtype)


def _diffusion_agg_kernel(a_ref, xw_ref, b_ref, *rest, c_out: int, training: bool):
    if training:
        u_ref, o_ref = rest
    else:
        (o_ref,) = rest
    # One 256-wide matmul covers both conv1 and conv2 aggregations.
    z = jnp.dot(a_ref[...], xw_ref[...], preferred_element_type=jnp.float32)
    z = z + b_ref[...]
    h1 = jnp.maximum(z[:, :c_out], 0.0)          # relu(conv1)
    h2 = z[:, c_out:]                            # conv2
    if training:
        # Dropout(p): keep with prob 1-p, scale kept values by 1/(1-p).
        keep = u_ref[...] >= DROPOUT_P
        h1 = jnp.where(keep, h1 * (1.0 / (1.0 - DROPOUT_P)), 0.0)
    o_ref[...] = (h1 + h2).astype(o_ref.dtype)


def diffusion_graph_conv(x, a_hat, w1, b1, w2, b2, *, dropout_key=None,
                         training=False, tile_m=None):
    n, c_in = x.shape
    c_out = w1.shape[1]
    if tile_m is None:
        tile_m = 256 if n % 256 == 0 else (128 if n % 128 == 0 else n)
    assert n % tile_m == 0

    w_cat = jnp.concatenate([w1, w2], axis=1)    # [C_in, 2*C_out]
    b_cat = jnp.concatenate([b1, b2], axis=1)    # [1, 2*C_out]

    # Kernel 1: grid-invariant feature transform, computed exactly once.
    xw = pl.pallas_call(
        _feature_transform_kernel,
        out_shape=jax.ShapeDtypeStruct((n, 2 * c_out), jnp.bfloat16),
        grid=(n // tile_m,),
        in_specs=[
            pl.BlockSpec((tile_m, c_in), lambda i: (i, 0)),        # X row tile
            pl.BlockSpec((c_in, 2 * c_out), lambda i: (0, 0)),     # [W1|W2]
        ],
        out_specs=pl.BlockSpec((tile_m, 2 * c_out), lambda i: (i, 0)),
        compiler_params=pltpu.CompilerParams(dimension_semantics=("parallel",)),
    )(x, w_cat)

    a_bf16 = a_hat.astype(jnp.bfloat16)          # bf16 halves the N^2 DMA bytes

    kernel = functools.partial(_diffusion_agg_kernel, c_out=c_out, training=training)
    in_specs = [
        pl.BlockSpec((tile_m, n), lambda i: (i, 0)),               # A_hat row tile
        pl.BlockSpec((n, 2 * c_out), lambda i: (0, 0)),            # XW (full)
        pl.BlockSpec((1, 2 * c_out), lambda i: (0, 0)),            # [b1|b2]
    ]
    operands = [a_bf16, xw, b_cat]
    if training:
        u = jax.random.uniform(dropout_key, (n, c_out), dtype=jnp.float32)
        in_specs.append(pl.BlockSpec((tile_m, c_out), lambda i: (i, 0)))
        operands.append(u)

    # Kernel 2: aggregation + bias + relu + dropout + residual add.
    return pl.pallas_call(
        kernel,
        out_shape=jax.ShapeDtypeStruct((n, c_out), jnp.float32),
        grid=(n // tile_m,),
        in_specs=in_specs,
        out_specs=pl.BlockSpec((tile_m, c_out), lambda i: (i, 0)),
        compiler_params=pltpu.CompilerParams(dimension_semantics=("parallel",)),
    )(*operands)


def build_gcn_norm_adjacency(edge_index, num_nodes):
    """Dense D^{-1/2}(A+I)D^{-1/2} with A[target, source] (PyG gcn_norm)."""
    src, tgt = edge_index[0], edge_index[1]
    a = jnp.zeros((num_nodes, num_nodes), jnp.float32).at[tgt, src].add(1.0)
    a = a + jnp.eye(num_nodes, dtype=jnp.float32)
    deg = a.sum(axis=1)
    d_inv_sqrt = jnp.where(deg > 0, jax.lax.rsqrt(deg), 0.0)
    return d_inv_sqrt[:, None] * a * d_inv_sqrt[None, :]


def reference_forward(x, a_hat, w1, b1, w2, b2):
    """Plain-JAX f32 reference of the eval-mode forward (dropout = identity)."""
    h1 = jnp.maximum(a_hat @ (x @ w1) + b1, 0.0)
    h2 = a_hat @ (x @ w2) + b2
    return h1 + h2


if __name__ == "__main__":
    N, C_IN, C_OUT, E = 128, 64, 128, 512

    key = jax.random.PRNGKey(0)
    k_x, k_e1, k_e2, k_w1, k_w2, k_drop = jax.random.split(key, 6)

    # Node features and a random directed edge list (2, E).
    x = jax.random.normal(k_x, (N, C_IN), dtype=jnp.float32)
    src = jax.random.randint(k_e1, (E,), 0, N, dtype=jnp.int32)
    tgt = jax.random.randint(k_e2, (E,), 0, N, dtype=jnp.int32)
    edge_index = jnp.stack([src, tgt], axis=0)

    # Deterministic parameter init (glorot-uniform weights, zero bias, like GCNConv).
    limit = (6.0 / (C_IN + C_OUT)) ** 0.5
    w1 = jax.random.uniform(k_w1, (C_IN, C_OUT), jnp.float32, -limit, limit)
    w2 = jax.random.uniform(k_w2, (C_IN, C_OUT), jnp.float32, -limit, limit)
    b1 = jnp.zeros((1, C_OUT), jnp.float32)
    b2 = jnp.zeros((1, C_OUT), jnp.float32)

    a_hat = build_gcn_norm_adjacency(edge_index, N)

    # Eval-mode run (dropout = identity) — check against the f32 JAX reference.
    # Tolerance is loosened because A_hat / XW enter the MXU as bf16.
    out_eval = diffusion_graph_conv(x, a_hat, w1, b1, w2, b2, training=False)
    jax.block_until_ready(out_eval)
    ref = reference_forward(x, a_hat, w1, b1, w2, b2)
    max_err = float(jnp.max(jnp.abs(out_eval - ref)))
    assert out_eval.shape == (N, C_OUT)
    assert jnp.allclose(out_eval, ref, atol=5e-2, rtol=5e-2), max_err

    # Training-mode run exercising the in-kernel dropout mask/select/scale path.
    out_train = diffusion_graph_conv(x, a_hat, w1, b1, w2, b2,
                                     dropout_key=k_drop, training=True)
    jax.block_until_ready(out_train)
    assert out_train.shape == (N, C_OUT)

    print("KERNEL_OK")
</pallas_src>

<mosaic_0001>
module attributes {stable_mosaic.version = 11 : i64} {
  func.func @_feature_transform_kernel(%arg0: i32, %arg1: memref<128x64xf32, #tpu.memory_space<vmem>>, %arg2: memref<64x256xf32, #tpu.memory_space<vmem>>, %arg3: memref<128x256xbf16, #tpu.memory_space<vmem>>) attributes {dimension_semantics = [#tpu.dimension_semantics<parallel>], iteration_bounds = array<i64: 1>, scalar_prefetch = 0 : i64, scratch_operands = 0 : i64, tpu.core_type = #tpu.core_type<tc>, window_params = [{transform_indices = @transform_0, window_bounds = array<i64: 128, 64>}, {pipeline_mode = #tpu.pipeline_mode<synchronous>, transform_indices = @transform_1, window_bounds = array<i64: 64, 256>}, {transform_indices = @transform_2, window_bounds = array<i64: 128, 256>}]} {
    %c0 = arith.constant 0 : index
    %c0_0 = arith.constant 0 : index
    %0 = vector.load %arg1[%c0, %c0_0] : memref<128x64xf32, #tpu.memory_space<vmem>>, vector<128x64xf32>
    %c0_1 = arith.constant 0 : index
    %c0_2 = arith.constant 0 : index
    %1 = vector.load %arg2[%c0_1, %c0_2] : memref<64x256xf32, #tpu.memory_space<vmem>>, vector<64x256xf32>
    %cst = arith.constant dense<0.000000e+00> : vector<128x256xf32>
    %2 = tpu.matmul %0, %1, %cst {dimension_numbers = #tpu.dot_dimension_numbers<[1], [0], [0], [1], [0, 0, 1, 1], [], []>} : vector<128x64xf32>, vector<64x256xf32>, vector<128x256xf32> -> vector<128x256xf32>
    %3 = arith.truncf %2 : vector<128x256xf32> to vector<128x256xbf16>
    %c0_3 = arith.constant 0 : index
    %c0_4 = arith.constant 0 : index
    %4 = vector.load %arg3[%c0_3, %c0_4] : memref<128x256xbf16, #tpu.memory_space<vmem>>, vector<128x256xbf16>
    tpu.vector_store %arg3[%c0_3, %c0_4], %3 {strides = array<i32>} : memref<128x256xbf16, #tpu.memory_space<vmem>>, vector<128x256xbf16>,
    return
  }
  func.func @transform_0(%arg0: i32) -> (i32, i32) {
    %c0_i32 = arith.constant 0 : i32
    %c0_i32_0 = arith.constant 0 : i32
    return %arg0, %c0_i32 : i32, i32
  }
  func.func @transform_1(%arg0: i32) -> (i32, i32) {
    %c0_i32 = arith.constant 0 : i32
    %c0_i32_0 = arith.constant 0 : i32
    %c0_i32_1 = arith.constant 0 : i32
    return %c0_i32, %c0_i32_0 : i32, i32
  }
  func.func @transform_2(%arg0: i32) -> (i32, i32) {
    %c0_i32 = arith.constant 0 : i32
    %c0_i32_0 = arith.constant 0 : i32
    return %arg0, %c0_i32 : i32, i32
  }
}

</mosaic_0001>

<bundles_post_ra>
// kernel: tpu_custom_call.1
= control target key start
LH: loop header
LB: loop body
LE: loop exit
PB: predicated region body
PF: predicated region fallthrough
CT: control target
= control target key end

     0   :  { %s606_s0 = inlined_call_operand.vmem [shape: f32[128,64], index: 0, kind: input, shape index: {}]   ;;  %s607_s1 = inlined_call_operand.vmem [shape: f32[64,256], index: 1, kind: input, shape index: {}]   ;;  %s608_s2 = inlined_call_operand.hbm [shape: bf16[128,256], index: 2, kind: output, shape index: {}]  }
   0x1   :  { %v43_v0 = vld [vmem:[%s607_s1 + $0x78] sm:$0xff]  ;;  %v42_v1 = vld [vmem:[%s607_s1 + $0x70] sm:$0xff]  ;;  %v41_v2 = vld [vmem:[%s607_s1 + $0x68] sm:$0xff] }
   0x2   :  { %109 = vmatprep.subr.mxu0 %v43_v0  ;;  %430 = vmatprep.subr.mxu1 %v43_v0  ;;  %v40_v3 = vld [vmem:[%s607_s1 + $0x60] sm:$0xff]  ;;  %v39_v4 = vld [vmem:[%s607_s1 + $0x58] sm:$0xff]  ;;  %v38_v5 = vld [vmem:[%s607_s1 + $0x50] sm:$0xff] }
   0x3   :  { %110 = vmatpush1.msra.mxu0 %v42_v1  ;;  %438 = vmatpush1.msra.mxu1 %v42_v1  ;;  %v37_v6 = vld [vmem:[%s607_s1 + $0x48] sm:$0xff]  ;;  %v36_v7 = vld [vmem:[%s607_s1 + $0x40] sm:$0xff]  ;;  %v35_v8 = vld [vmem:[%s607_s1 + $0x38] sm:$0xff] }
   0x4   :  { %111 = vmatprep.subr.mxu0 %v41_v2  ;;  %431 = vmatprep.subr.mxu1 %v41_v2  ;;  %v34_v9 = vld [vmem:[%s607_s1 + $0x30] sm:$0xff]  ;;  %v33_v10 = vld [vmem:[%s607_s1 + $0x28] sm:$0xff]  ;;  %v32_v11 = vld [vmem:[%s607_s1 + $0x20] sm:$0xff] }
   0x5   :  { %112 = vmatpush1.msra.mxu0 %v40_v3  ;;  %439 = vmatpush1.msra.mxu1 %v40_v3  ;;  %v31_v12 = vld [vmem:[%s607_s1 + $0x18] sm:$0xff] }
   0x6   :  { %113 = vmatprep.subr.mxu0 %v39_v4  ;;  %432 = vmatprep.subr.mxu1 %v39_v4 }
   0x7   :  { %114 = vmatpush1.msra.mxu0 %v38_v5  ;;  %440 = vmatpush1.msra.mxu1 %v38_v5 }
   0x8   :  { %115 = vmatprep.subr.mxu0 %v37_v6  ;;  %433 = vmatprep.subr.mxu1 %v37_v6 }
   0x9   :  { %116 = vmatpush1.msra.mxu0 %v36_v7  ;;  %441 = vmatpush1.msra.mxu1 %v36_v7 }
   0xa   :  { %117 = vmatprep.subr.mxu0 %v35_v8  ;;  %434 = vmatprep.subr.mxu1 %v35_v8 }
   0xb   :  { %118 = vmatpush1.msra.mxu0 %v34_v9  ;;  %442 = vmatpush1.msra.mxu1 %v34_v9 }
   0xc   :  { %7 = vsyncpa [#allocation3], 0  ;;  %119 = vmatprep.subr.mxu0 %v33_v10  ;;  %435 = vmatprep.subr.mxu1 %v33_v10  ;;  %v30_v13 = vld [vmem:[%s607_s1 + $0x10] sm:$0xff]  ;;  %v29_v14 = vld [vmem:[%s607_s1 + $0x8] sm:$0xff]  ;;  %vm44_vm0 = vcmask 523264   ;;  %v472_v18 = vmov 0.0  }
   0xd   :  { %120 = vmatpush1.msra.mxu0 %v32_v11  ;;  %443 = vmatpush1.msra.mxu1 %v32_v11  ;;  %v28_v15 = vld [vmem:[%s607_s1] sm:$0xff]  ;;  %v13_v19 = vld [vmem:[%s606_s0 + $0x8] sm:$0xff]  ;;  %v14_v21 = vld [vmem:[%s606_s0 + $0x10] sm:$0xff] }
   0xe   :  { %121 = vmatprep.subr.mxu0 %v31_v12  ;;  %436 = vmatprep.subr.mxu1 %v31_v12  ;;  %v12_v16 = vld [vmem:[%s606_s0] sm:$0xff]  ;;  %v21_v20 = vld [vmem:[%s606_s0 + $0x48] sm:$0xff]  ;;  %v22_v22 = vld [vmem:[%s606_s0 + $0x50] sm:$0xff] }
   0xf   :  { %122 = vmatpush1.msra.mxu0 %v30_v13  ;;  %444 = vmatpush1.msra.mxu1 %v30_v13  ;;  %v20_v17 = vld [vmem:[%s606_s0 + $0x40] sm:$0xff]  ;;  %v15_v23 = vld [vmem:[%s606_s0 + $0x18] sm:$0xff]  ;;  %v17_v27 = vld [vmem:[%s606_s0 + $0x28] sm:$0xff] }
  0x10   :  { %123 = vmatprep.subr.mxu0 %v29_v14  ;;  %437 = vmatprep.subr.mxu1 %v29_v14  ;;  %v23_v24 = vld [vmem:[%s606_s0 + $0x58] sm:$0xff]  ;;  %v16_v25 = vld [vmem:[%s606_s0 + $0x20] sm:$0xff]  ;;  %v25_v28 = vld [vmem:[%s606_s0 + $0x68] sm:$0xff] }
  0x11   :  { %124 = vmatpush1.msra.mxu0 %v28_v15  ;;  %445 = vmatpush1.msra.mxu1 %v28_v15  ;;  %v24_v26 = vld [vmem:[%s606_s0 + $0x60] sm:$0xff]  ;;  %v18_v29 = vld [vmem:[%s606_s0 + $0x30] sm:$0xff]  ;;  %v19_v31 = vld [vmem:[%s606_s0 + $0x38] sm:$0xff] }
  0x12   :  { %157 = vmatprep.mubr.f32.mxu0 %v472_v18  ;;  %205 = vmatprep.mubr.f32.mxu1 %v472_v18  ;;  %v26_v30 = vld [vmem:[%s606_s0 + $0x70] sm:$0xff]  ;;  %v27_v32 = vld [vmem:[%s606_s0 + $0x78] sm:$0xff]  ;;  %s473_s0 = smov [#allocation2]  }
  0x13   :  { %382 = vmatmul.mubr.msk.f32.vlgmr.msra.gmra.mxu0 %vm44_vm0, %v12_v16  ;;  %390 = vmatmul.mubr.msk.f32.vlgmr.msra.gmra.mxu1 %vm44_vm0, %v20_v17  ;;  %s371_s16 = sshll.u32 %s473_s0, 4  ;;  %s372_s16 = int_to_ptr.vmem [resolvable:$true] %s371_s16 }
  0x14   :  { %163 = vmatprep.mubr.f32.mxu0 %v472_v18  ;;  %211 = vmatprep.mubr.f32.mxu1 %v472_v18  ;;  %s450_s1 = scalar_lea.vmem %s372_s16, 2048  ;;  %p455_p1 = scmp.lt.s32.totalorder %s372_s16, %s372_s16 }
  0x15   :  { %p451_p0 = scmp.ne.s32.totalorder %s372_s16, %s450_s1  ;;  %p456_p2 = scmp.lt.s32.totalorder %s450_s1, %s450_s1 }
  0x17   :  { %383 = vmatmul.mubr.msk.f32.gmra.mxu0 %vm44_vm0, %v13_v19  ;;  %391 = vmatmul.mubr.msk.f32.gmra.mxu1 %vm44_vm0, %v21_v20  ;;  %p457_p3 = por %p456_p2, %p455_p1 }
  0x18   :  { %169 = vmatprep.mubr.f32.mxu0 %v472_v18  ;;  %217 = vmatprep.mubr.f32.mxu1 %v472_v18 }
  0x19   :  { %p458_p4 = pnand %p457_p3, %p451_p0 }
  0x1b   :  { %384 = vmatmul.mubr.msk.f32.gmra.mxu0 %vm44_vm0, %v14_v21  ;;  %392 = vmatmul.mubr.msk.f32.gmra.mxu1 %vm44_vm0, %v22_v22 }
  0x1c   :  { %175 = vmatprep.mubr.f32.mxu0 %v472_v18  ;;  %223 = vmatprep.mubr.f32.mxu1 %v472_v18 }
  0x1f   :  { %385 = vmatmul.mubr.msk.f32.gmra.mxu0 %vm44_vm0, %v15_v23  ;;  %393 = vmatmul.mubr.msk.f32.gmra.mxu1 %vm44_vm0, %v23_v24 }
  0x20   :  { %181 = vmatprep.mubr.f32.mxu0 %v472_v18  ;;  %229 = vmatprep.mubr.f32.mxu1 %v472_v18 }
  0x23   :  { %386 = vmatmul.mubr.msk.f32.gmra.mxu0 %vm44_vm0, %v16_v25  ;;  %394 = vmatmul.mubr.msk.f32.gmra.mxu1 %vm44_vm0, %v24_v26 }
  0x24   :  { %187 = vmatprep.mubr.f32.mxu0 %v472_v18  ;;  %235 = vmatprep.mubr.f32.mxu1 %v472_v18 }
  0x27   :  { %387 = vmatmul.mubr.msk.f32.gmra.mxu0 %vm44_vm0, %v17_v27  ;;  %395 = vmatmul.mubr.msk.f32.gmra.mxu1 %vm44_vm0, %v25_v28 }
  0x28   :  { %193 = vmatprep.mubr.f32.mxu0 %v472_v18  ;;  %241 = vmatprep.mubr.f32.mxu1 %v472_v18 }
  0x2b   :  { %388 = vmatmul.mubr.msk.f32.gmra.mxu0 %vm44_vm0, %v18_v29  ;;  %396 = vmatmul.mubr.msk.f32.gmra.mxu1 %vm44_vm0, %v26_v30 }
  0x2c   :  { %199 = vmatprep.mubr.f32.mxu0 %v472_v18  ;;  %247 = vmatprep.mubr.f32.mxu1 %v472_v18 }
  0x2f   :  { %389 = vmatmul.mubr.msk.f32.gmra.mxu0 %vm44_vm0, %v19_v31  ;;  %397 = vmatmul.mubr.msk.f32.gmra.mxu1 %vm44_vm0, %v27_v32 }
  0xd3   :  { %v159_v33 = vpop.f32.mrf.mxu0  ;;  %v207_v34 = vpop.f32.mrf.mxu1 }
  0xd5   :  { %v161_v35 = vpop.f32.mrf.mxu0  ;;  %v209_v36 = vpop.f32.mrf.mxu1 }
  0xd6   :  { %v414_v37 = vpack.c.bf16 %v161_v35, %v159_v33  ;;  %v422_v38 = vpack.c.bf16 %v209_v36, %v207_v34 }
  0xd7   :  { %v165_v39 = vpop.f32.mrf.mxu0  ;;  %v213_v40 = vpop.f32.mrf.mxu1 }
  0xd8   :  { %350 = vst [vmem:[#allocation2] sm:$0xff] %v414_v37  ;;  %358 = vst [vmem:[#allocation2 + $0x40] sm:$0xff] %v422_v38 }
  0xd9   :  { %v167_v41 = vpop.f32.mrf.mxu0  ;;  %v215_v42 = vpop.f32.mrf.mxu1 }
  0xda   :  { %v415_v43 = vpack.c.bf16 %v167_v41, %v165_v39  ;;  %v423_v44 = vpack.c.bf16 %v215_v42, %v213_v40 }
  0xdb   :  { %v171_v45 = vpop.f32.mrf.mxu0  ;;  %v219_v46 = vpop.f32.mrf.mxu1 }
  0xdc   :  { %351 = vst [vmem:[#allocation2 + $0x8] sm:$0xff] %v415_v43  ;;  %359 = vst [vmem:[#allocation2 + $0x48] sm:$0xff] %v423_v44 }
  0xdd   :  { %v173_v47 = vpop.f32.mrf.mxu0  ;;  %v221_v48 = vpop.f32.mrf.mxu1 }
  0xde   :  { %v416_v49 = vpack.c.bf16 %v173_v47, %v171_v45  ;;  %v424_v50 = vpack.c.bf16 %v221_v48, %v219_v46 }
  0xdf   :  { %v177_v51 = vpop.f32.mrf.mxu0  ;;  %v225_v52 = vpop.f32.mrf.mxu1 }
  0xe0   :  { %352 = vst [vmem:[#allocation2 + $0x10] sm:$0xff] %v416_v49  ;;  %360 = vst [vmem:[#allocation2 + $0x50] sm:$0xff] %v424_v50 }
  0xe1   :  { %v179_v53 = vpop.f32.mrf.mxu0  ;;  %v227_v54 = vpop.f32.mrf.mxu1 }
  0xe2   :  { %v417_v55 = vpack.c.bf16 %v179_v53, %v177_v51  ;;  %v425_v56 = vpack.c.bf16 %v227_v54, %v225_v52 }
  0xe3   :  { %v183_v57 = vpop.f32.mrf.mxu0  ;;  %v231_v58 = vpop.f32.mrf.mxu1 }
  0xe4   :  { %353 = vst [vmem:[#allocation2 + $0x18] sm:$0xff] %v417_v55  ;;  %361 = vst [vmem:[#allocation2 + $0x58] sm:$0xff] %v425_v56 }
  0xe5   :  { %v185_v59 = vpop.f32.mrf.mxu0  ;;  %v233_v60 = vpop.f32.mrf.mxu1 }
  0xe6   :  { %v418_v61 = vpack.c.bf16 %v185_v59, %v183_v57  ;;  %v426_v62 = vpack.c.bf16 %v233_v60, %v231_v58 }
  0xe7   :  { %v189_v63 = vpop.f32.mrf.mxu0  ;;  %v237_v0 = vpop.f32.mrf.mxu1 }
  0xe8   :  { %354 = vst [vmem:[#allocation2 + $0x20] sm:$0xff] %v418_v61  ;;  %362 = vst [vmem:[#allocation2 + $0x60] sm:$0xff] %v426_v62 }
  0xe9   :  { %v191_v1 = vpop.f32.mrf.mxu0  ;;  %v239_v2 = vpop.f32.mrf.mxu1 }
  0xea   :  { %v419_v3 = vpack.c.bf16 %v191_v1, %v189_v63  ;;  %v427_v4 = vpack.c.bf16 %v239_v2, %v237_v0 }
  0xeb   :  { %v195_v5 = vpop.f32.mrf.mxu0  ;;  %v243_v6 = vpop.f32.mrf.mxu1 }
  0xec   :  { %355 = vst [vmem:[#allocation2 + $0x28] sm:$0xff] %v419_v3  ;;  %363 = vst [vmem:[#allocation2 + $0x68] sm:$0xff] %v427_v4 }
  0xed   :  { %v197_v7 = vpop.f32.mrf.mxu0  ;;  %v245_v8 = vpop.f32.mrf.mxu1 }
  0xee   :  { %v420_v9 = vpack.c.bf16 %v197_v7, %v195_v5  ;;  %v428_v10 = vpack.c.bf16 %v245_v8, %v243_v6 }
  0xef   :  { %v201_v11 = vpop.f32.mrf.mxu0  ;;  %v249_v12 = vpop.f32.mrf.mxu1 }
  0xf0   :  { %356 = vst [vmem:[#allocation2 + $0x30] sm:$0xff] %v420_v9  ;;  %364 = vst [vmem:[#allocation2 + $0x70] sm:$0xff] %v428_v10 }
  0xf1   :  { %v203_v13 = vpop.f32.mrf.mxu0  ;;  %v251_v14 = vpop.f32.mrf.mxu1 }
  0xf2   :  { %v421_v15 = vpack.c.bf16 %v203_v13, %v201_v11  ;;  %v429_v16 = vpack.c.bf16 %v251_v14, %v249_v12 }
  0xf4   :  { %357 = vst [vmem:[#allocation2 + $0x38] sm:$0xff] %v421_v15  ;;  %365 = vst [vmem:[#allocation2 + $0x78] sm:$0xff] %v429_v16 }
  0xf5   :  { %461 = shalt.err (!%p458_p4)
}
  0xf6   :  { %s474_s17 = smov 128   ;;  %s475_s18 = smov 8  }
  0xf7   :  { %377 = dma.vmem_to_hbm [thread:$0]  %s372_s16, 2048, %s608_s2, [#allocation3], %s474_s17, %s474_s17, %s475_s18  }
  0xf8   :  { %470 = dma.done.wait [#allocation3], 2048  }
  0xf9   :  { %471 = vsyncadd [#allocation3], 4294965248 }
  0xfa   :  { %381 = vsyncpa [#allocation3], 1 }

</bundles_post_ra>
